<compile_context>
chip_gen: v6e
topology: v6e:2x2x1
jax: 0.10.0
libtpu: 0.0.40
codegen_flags: <defaults>
</compile_context>

<pallas_src>
import functools
import math

import jax
import jax.numpy as jnp
from jax.experimental import pallas as pl
from jax.experimental.pallas import tpu as pltpu


# ---------------------------------------------------------------------------
# in-kernel helpers (float32 VPU/EUP math)
# ---------------------------------------------------------------------------
def _gelu(x):
    # tanh approximation of gelu
    c = math.sqrt(2.0 / math.pi)
    return 0.5 * x * (1.0 + jnp.tanh(c * (x + 0.044715 * x * x * x)))


def _layer_norm(x, gamma, beta, eps=1e-12):
    # BertLayerNorm: u = mean(x); s = mean((x-u)^2); (x-u)*rsqrt(s+eps)*g + b
    u = jnp.mean(x, axis=-1, keepdims=True)
    d = x - u
    s = jnp.mean(d * d, axis=-1, keepdims=True)
    return d * jax.lax.rsqrt(s + eps) * gamma + beta


# ---------------------------------------------------------------------------
# kernel: one full BertLayer for one batch element
# ---------------------------------------------------------------------------
def _bert_layer_kernel(hs_ref, mask_ref,
                       qkv_w_ref, qkv_b_ref, ao_w_ref, ao_b_ref,
                       ln1_g_ref, ln1_b_ref, i_w_ref, i_b_ref,
                       o_w_ref, o_b_ref, ln2_g_ref, ln2_b_ref,
                       out_ref, *, num_heads, head_size):
    S, H = hs_ref.shape
    dh = head_size

    hs = hs_ref[...]                              # (S, H)   float32
    mask = mask_ref[...].reshape(1, 1, S)         # (1, 1, S) additive, float32

    def mm(x, w_ref):
        # MXU matmul: bf16 operands, float32 accumulation.
        return jnp.dot(x.astype(w_ref.dtype), w_ref[...],
                       preferred_element_type=jnp.float32)

    # ---- fused Q/K/V projection ------------------------------------------
    qkv = mm(hs, qkv_w_ref) + qkv_b_ref[...]      # (S, 3H) float32

    inv_sqrt = 1.0 / math.sqrt(dh)
    q2 = qkv[:, 0 * H:1 * H] * inv_sqrt           # scale folded into q once
    k2 = qkv[:, 1 * H:2 * H]
    v2 = qkv[:, 2 * H:3 * H]

    def split_heads(x):                           # (S, H) -> (NH, S, dh)
        return jnp.stack(
            [x[:, h * dh:(h + 1) * dh] for h in range(num_heads)], axis=0)

    q3 = split_heads(q2).astype(jnp.bfloat16)
    k3 = split_heads(k2).astype(jnp.bfloat16)
    v3 = split_heads(v2).astype(jnp.bfloat16)

    # ---- batched multi-head attention (single contraction over heads) ----
    scores = jnp.einsum('hqd,hkd->hqk', q3, k3,
                        preferred_element_type=jnp.float32)    # (NH, S, S) f32
    scores = scores + mask                                     # one mask add
    scores = scores - jnp.max(scores, axis=-1, keepdims=True)
    p = jnp.exp(scores)
    p = p * pl.reciprocal(jnp.sum(p, axis=-1, keepdims=True), approx=True)

    ctx3 = jnp.einsum('hqk,hkd->hqd', p.astype(jnp.bfloat16), v3,
                      preferred_element_type=jnp.float32)      # (NH, S, dh)
    ctx = jnp.concatenate([ctx3[h] for h in range(num_heads)], axis=-1)  # (S,H)

    # ---- BertSelfOutput: dense + residual + LayerNorm ---------------------
    attn_out = mm(ctx, ao_w_ref) + ao_b_ref[...]
    x1 = _layer_norm(attn_out + hs, ln1_g_ref[...], ln1_b_ref[...])

    # ---- BertIntermediate (gelu) + BertOutput + LayerNorm ------------------
    inter = _gelu(mm(x1, i_w_ref) + i_b_ref[...])
    out = mm(inter, o_w_ref) + o_b_ref[...]
    out_ref[...] = _layer_norm(out + x1, ln2_g_ref[...], ln2_b_ref[...]
                               ).astype(out_ref.dtype)


# ---------------------------------------------------------------------------
# wrappers
# ---------------------------------------------------------------------------
_PACKED_ORDER = ['qkv_w', 'qkv_b', 'ao_w', 'ao_b', 'ln1_g', 'ln1_b',
                 'i_w', 'i_b', 'o_w', 'o_b', 'ln2_g', 'ln2_b']


def pack_layer_params(p):
    """Fuse q/k/v, cast matmul weights to bf16 once (halves weight DMA)."""
    bf16 = lambda x: x.astype(jnp.bfloat16)
    return {
        'qkv_w': bf16(jnp.concatenate([p['q_w'], p['k_w'], p['v_w']], axis=1)),
        'qkv_b': jnp.concatenate([p['q_b'], p['k_b'], p['v_b']],
                                 axis=1).astype(jnp.float32),
        'ao_w': bf16(p['ao_w']), 'ao_b': p['ao_b'],
        'ln1_g': p['ln1_g'], 'ln1_b': p['ln1_b'],
        'i_w': bf16(p['i_w']), 'i_b': p['i_b'],
        'o_w': bf16(p['o_w']), 'o_b': p['o_b'],
        'ln2_g': p['ln2_g'], 'ln2_b': p['ln2_b'],
    }


def _bert_layer_forward(hidden_states, attention_mask, packed,
                        num_heads, head_size):
    B, S, H = hidden_states.shape
    # (B, 1, 1, S) -> (B, 1, S) outside the kernel (zero-cost layout plumbing)
    mask3 = attention_mask.reshape(B, 1, S).astype(jnp.float32)
    weights = [packed[k] for k in _PACKED_ORDER]

    in_specs = [
        pl.BlockSpec((None, S, H), lambda b: (b, 0, 0)),   # hidden_states
        pl.BlockSpec((None, 1, S), lambda b: (b, 0, 0)),   # additive mask
    ] + [pl.BlockSpec(w.shape, lambda b: (0, 0)) for w in weights]

    return pl.pallas_call(
        functools.partial(_bert_layer_kernel,
                          num_heads=num_heads, head_size=head_size),
        out_shape=jax.ShapeDtypeStruct((B, S, H), hidden_states.dtype),
        grid=(B,),
        in_specs=in_specs,
        out_specs=pl.BlockSpec((None, S, H), lambda b: (b, 0, 0)),
        compiler_params=pltpu.CompilerParams(
            dimension_semantics=("parallel",)),   # v7x: shard batch over 2 TCs
    )(hidden_states, mask3, *weights)


def addbert_encoder(hidden_states, attention_mask, layer_params, num_heads,
                    output_all_encoded_layers=True):
    """ADDBertEncoder.forward: loop over (one) BertLayer."""
    head_size = hidden_states.shape[-1] // num_heads
    all_encoder_layers = []
    for params in layer_params:
        packed = pack_layer_params(params)
        hidden_states = _bert_layer_forward(hidden_states, attention_mask,
                                            packed, num_heads, head_size)
        if output_all_encoded_layers:
            all_encoder_layers.append(hidden_states)
    if not output_all_encoded_layers:
        all_encoder_layers.append(hidden_states)
    return all_encoder_layers


# ---------------------------------------------------------------------------
# deterministic parameter init (synthetic; no checkpoint load)
# ---------------------------------------------------------------------------
def init_layer_params(key, hidden, intermediate):
    keys = jax.random.split(key, 12)
    std = 0.02

    def lin(kw, kb, din, dout):
        w = jax.random.normal(kw, (din, dout), jnp.float32) * std
        b = jax.random.normal(kb, (1, dout), jnp.float32) * std
        return w, b

    p = {}
    p['q_w'], p['q_b'] = lin(keys[0], keys[1], hidden, hidden)
    p['k_w'], p['k_b'] = lin(keys[2], keys[3], hidden, hidden)
    p['v_w'], p['v_b'] = lin(keys[4], keys[5], hidden, hidden)
    p['ao_w'], p['ao_b'] = lin(keys[6], keys[7], hidden, hidden)
    p['ln1_g'] = jnp.ones((1, hidden), jnp.float32)
    p['ln1_b'] = jnp.zeros((1, hidden), jnp.float32)
    p['i_w'], p['i_b'] = lin(keys[8], keys[9], hidden, intermediate)
    p['o_w'], p['o_b'] = lin(keys[10], keys[11], intermediate, hidden)
    p['ln2_g'] = jnp.ones((1, hidden), jnp.float32)
    p['ln2_b'] = jnp.zeros((1, hidden), jnp.float32)
    return p


# ---------------------------------------------------------------------------
# main
# ---------------------------------------------------------------------------
if __name__ == "__main__":
    # small BERT-like config; ADDBertEncoder has exactly 1 BertLayer
    B, S, H, NH, I, L = 2, 8, 32, 4, 64, 1

    key = jax.random.PRNGKey(0)
    k_hs, k_params = jax.random.split(key, 2)

    hidden_states = jax.random.normal(k_hs, (B, S, H), jnp.float32)

    # binary mask -> extended additive mask [B, 1, 1, S] (as BertModel does)
    valid = jnp.ones((B, S), jnp.float32).at[1, -2:].set(0.0)
    attention_mask = ((1.0 - valid) * -10000.0)[:, None, None, :]

    layer_keys = jax.random.split(k_params, L)
    layer_params = [init_layer_params(layer_keys[i], H, I) for i in range(L)]

    all_layers = addbert_encoder(hidden_states, attention_mask, layer_params,
                                 NH, output_all_encoded_layers=True)
    jax.block_until_ready(all_layers)

    assert len(all_layers) == L
    for o in all_layers:
        assert o.shape == (B, S, H)
        assert bool(jnp.all(jnp.isfinite(o)))
    print("KERNEL_OK")
</pallas_src>

<mosaic_0001>
module attributes {stable_mosaic.version = 11 : i64} {
  func.func @_bert_layer_kernel(%arg0: i32, %arg1: memref<1x8x32xf32, #tpu.memory_space<vmem>>, %arg2: memref<1x1x8xf32, #tpu.memory_space<vmem>>, %arg3: memref<32x96xbf16, #tpu.memory_space<vmem>>, %arg4: memref<1x96xf32, #tpu.memory_space<vmem>>, %arg5: memref<32x32xbf16, #tpu.memory_space<vmem>>, %arg6: memref<1x32xf32, #tpu.memory_space<vmem>>, %arg7: memref<1x32xf32, #tpu.memory_space<vmem>>, %arg8: memref<1x32xf32, #tpu.memory_space<vmem>>, %arg9: memref<32x64xbf16, #tpu.memory_space<vmem>>, %arg10: memref<1x64xf32, #tpu.memory_space<vmem>>, %arg11: memref<64x32xbf16, #tpu.memory_space<vmem>>, %arg12: memref<1x32xf32, #tpu.memory_space<vmem>>, %arg13: memref<1x32xf32, #tpu.memory_space<vmem>>, %arg14: memref<1x32xf32, #tpu.memory_space<vmem>>, %arg15: memref<1x8x32xf32, #tpu.memory_space<vmem>>) attributes {dimension_semantics = [#tpu.dimension_semantics<parallel>], iteration_bounds = array<i64: 2>, scalar_prefetch = 0 : i64, scratch_operands = 0 : i64, tpu.core_type = #tpu.core_type<tc>, window_params = [{transform_indices = @transform_0, window_bounds = array<i64: 1, 8, 32>}, {transform_indices = @transform_1, window_bounds = array<i64: 1, 1, 8>}, {pipeline_mode = #tpu.pipeline_mode<synchronous>, transform_indices = @transform_2, window_bounds = array<i64: 32, 96>}, {pipeline_mode = #tpu.pipeline_mode<synchronous>, transform_indices = @transform_3, window_bounds = array<i64: 1, 96>}, {pipeline_mode = #tpu.pipeline_mode<synchronous>, transform_indices = @transform_4, window_bounds = array<i64: 32, 32>}, {pipeline_mode = #tpu.pipeline_mode<synchronous>, transform_indices = @transform_5, window_bounds = array<i64: 1, 32>}, {pipeline_mode = #tpu.pipeline_mode<synchronous>, transform_indices = @transform_6, window_bounds = array<i64: 1, 32>}, {pipeline_mode = #tpu.pipeline_mode<synchronous>, transform_indices = @transform_7, window_bounds = array<i64: 1, 32>}, {pipeline_mode = #tpu.pipeline_mode<synchronous>, transform_indices = @transform_8, window_bounds = array<i64: 32, 64>}, {pipeline_mode = #tpu.pipeline_mode<synchronous>, transform_indices = @transform_9, window_bounds = array<i64: 1, 64>}, {pipeline_mode = #tpu.pipeline_mode<synchronous>, transform_indices = @transform_10, window_bounds = array<i64: 64, 32>}, {pipeline_mode = #tpu.pipeline_mode<synchronous>, transform_indices = @transform_11, window_bounds = array<i64: 1, 32>}, {pipeline_mode = #tpu.pipeline_mode<synchronous>, transform_indices = @transform_12, window_bounds = array<i64: 1, 32>}, {pipeline_mode = #tpu.pipeline_mode<synchronous>, transform_indices = @transform_13, window_bounds = array<i64: 1, 32>}, {transform_indices = @transform_14, window_bounds = array<i64: 1, 8, 32>}]} {
    %c0 = arith.constant 0 : index
    %c0_0 = arith.constant 0 : index
    %c0_1 = arith.constant 0 : index
    %0 = vector.load %arg1[%c0, %c0_0, %c0_1] : memref<1x8x32xf32, #tpu.memory_space<vmem>>, vector<1x8x32xf32>
    %1 = vector.shape_cast %0 : vector<1x8x32xf32> to vector<8x32xf32>
    %c0_2 = arith.constant 0 : index
    %c0_3 = arith.constant 0 : index
    %c0_4 = arith.constant 0 : index
    %2 = vector.load %arg2[%c0_2, %c0_3, %c0_4] : memref<1x1x8xf32, #tpu.memory_space<vmem>>, vector<1x1x8xf32>
    %3 = vector.shape_cast %2 : vector<1x1x8xf32> to vector<1x8xf32>
    %4 = vector.shape_cast %3 : vector<1x8xf32> to vector<1x1x8xf32>
    %5 = arith.truncf %1 : vector<8x32xf32> to vector<8x32xbf16>
    %c0_5 = arith.constant 0 : index
    %c0_6 = arith.constant 0 : index
    %6 = vector.load %arg3[%c0_5, %c0_6] : memref<32x96xbf16, #tpu.memory_space<vmem>>, vector<32x96xbf16>
    %cst = arith.constant dense<0.000000e+00> : vector<8x96xf32>
    %7 = tpu.matmul %5, %6, %cst {dimension_numbers = #tpu.dot_dimension_numbers<[1], [0], [0], [1], [0, 0, 1, 1], [], []>} : vector<8x32xbf16>, vector<32x96xbf16>, vector<8x96xf32> -> vector<8x96xf32>
    %c0_7 = arith.constant 0 : index
    %c0_8 = arith.constant 0 : index
    %8 = vector.load %arg4[%c0_7, %c0_8] : memref<1x96xf32, #tpu.memory_space<vmem>>, vector<1x96xf32>
    %9 = vector.broadcast %8 : vector<1x96xf32> to vector<8x96xf32>
    %10 = arith.addf %7, %9 : vector<8x96xf32>
    %11 = vector.extract_strided_slice %10 {offsets = [0, 0], sizes = [8, 32], strides = [1, 1]} : vector<8x96xf32> to vector<8x32xf32>
    %cst_9 = arith.constant 0.353553385 : f32
    %12 = vector.broadcast %cst_9 : f32 to vector<8x32xf32>
    %13 = arith.mulf %11, %12 : vector<8x32xf32>
    %14 = vector.extract_strided_slice %10 {offsets = [0, 32], sizes = [8, 32], strides = [1, 1]} : vector<8x96xf32> to vector<8x32xf32>
    %15 = vector.extract_strided_slice %10 {offsets = [0, 64], sizes = [8, 32], strides = [1, 1]} : vector<8x96xf32> to vector<8x32xf32>
    %16 = vector.extract_strided_slice %13 {offsets = [0, 0], sizes = [8, 8], strides = [1, 1]} : vector<8x32xf32> to vector<8x8xf32>
    %17 = vector.extract_strided_slice %13 {offsets = [0, 8], sizes = [8, 8], strides = [1, 1]} : vector<8x32xf32> to vector<8x8xf32>
    %18 = vector.extract_strided_slice %13 {offsets = [0, 16], sizes = [8, 8], strides = [1, 1]} : vector<8x32xf32> to vector<8x8xf32>
    %19 = vector.extract_strided_slice %13 {offsets = [0, 24], sizes = [8, 8], strides = [1, 1]} : vector<8x32xf32> to vector<8x8xf32>
    %20 = vector.shape_cast %16 : vector<8x8xf32> to vector<1x8x8xf32>
    %21 = vector.shape_cast %17 : vector<8x8xf32> to vector<1x8x8xf32>
    %22 = vector.shape_cast %18 : vector<8x8xf32> to vector<1x8x8xf32>
    %23 = vector.shape_cast %19 : vector<8x8xf32> to vector<1x8x8xf32>
    %24 = tpu.concatenate %20, %21, %22, %23 in 0 : vector<1x8x8xf32>, vector<1x8x8xf32>, vector<1x8x8xf32>, vector<1x8x8xf32> -> vector<4x8x8xf32>
    %25 = arith.truncf %24 : vector<4x8x8xf32> to vector<4x8x8xbf16>
    %26 = vector.extract_strided_slice %14 {offsets = [0, 0], sizes = [8, 8], strides = [1, 1]} : vector<8x32xf32> to vector<8x8xf32>
    %27 = vector.extract_strided_slice %14 {offsets = [0, 8], sizes = [8, 8], strides = [1, 1]} : vector<8x32xf32> to vector<8x8xf32>
    %28 = vector.extract_strided_slice %14 {offsets = [0, 16], sizes = [8, 8], strides = [1, 1]} : vector<8x32xf32> to vector<8x8xf32>
    %29 = vector.extract_strided_slice %14 {offsets = [0, 24], sizes = [8, 8], strides = [1, 1]} : vector<8x32xf32> to vector<8x8xf32>
    %30 = vector.shape_cast %26 : vector<8x8xf32> to vector<1x8x8xf32>
    %31 = vector.shape_cast %27 : vector<8x8xf32> to vector<1x8x8xf32>
    %32 = vector.shape_cast %28 : vector<8x8xf32> to vector<1x8x8xf32>
    %33 = vector.shape_cast %29 : vector<8x8xf32> to vector<1x8x8xf32>
    %34 = tpu.concatenate %30, %31, %32, %33 in 0 : vector<1x8x8xf32>, vector<1x8x8xf32>, vector<1x8x8xf32>, vector<1x8x8xf32> -> vector<4x8x8xf32>
    %35 = arith.truncf %34 : vector<4x8x8xf32> to vector<4x8x8xbf16>
    %36 = vector.extract_strided_slice %15 {offsets = [0, 0], sizes = [8, 8], strides = [1, 1]} : vector<8x32xf32> to vector<8x8xf32>
    %37 = vector.extract_strided_slice %15 {offsets = [0, 8], sizes = [8, 8], strides = [1, 1]} : vector<8x32xf32> to vector<8x8xf32>
    %38 = vector.extract_strided_slice %15 {offsets = [0, 16], sizes = [8, 8], strides = [1, 1]} : vector<8x32xf32> to vector<8x8xf32>
    %39 = vector.extract_strided_slice %15 {offsets = [0, 24], sizes = [8, 8], strides = [1, 1]} : vector<8x32xf32> to vector<8x8xf32>
    %40 = vector.shape_cast %36 : vector<8x8xf32> to vector<1x8x8xf32>
    %41 = vector.shape_cast %37 : vector<8x8xf32> to vector<1x8x8xf32>
    %42 = vector.shape_cast %38 : vector<8x8xf32> to vector<1x8x8xf32>
    %43 = vector.shape_cast %39 : vector<8x8xf32> to vector<1x8x8xf32>
    %44 = tpu.concatenate %40, %41, %42, %43 in 0 : vector<1x8x8xf32>, vector<1x8x8xf32>, vector<1x8x8xf32>, vector<1x8x8xf32> -> vector<4x8x8xf32>
    %45 = arith.truncf %44 : vector<4x8x8xf32> to vector<4x8x8xbf16>
    "tpu.trace_start"() <{level = 10 : i32, message = "hqd,hkd->hqk"}> : () -> ()
    %cst_10 = arith.constant dense<0.000000e+00> : vector<4x8x8xf32>
    %46 = tpu.matmul %25, %35, %cst_10 {dimension_numbers = #tpu.dot_dimension_numbers<[2], [2], [1], [1], [0, 0, 0, 1, 1, 1], [0], [0]>} : vector<4x8x8xbf16>, vector<4x8x8xbf16>, vector<4x8x8xf32> -> vector<4x8x8xf32>
    "tpu.trace_stop"() : () -> ()
    %47 = vector.broadcast %4 : vector<1x1x8xf32> to vector<4x8x8xf32>
    %48 = arith.addf %46, %47 : vector<4x8x8xf32>
    %cst_11 = arith.constant dense<0xFF800000> : vector<4x8xf32>
    %49 = vector.multi_reduction <maximumf>, %48, %cst_11 [2] : vector<4x8x8xf32> to vector<4x8xf32>
    %50 = vector.shape_cast %49 : vector<4x8xf32> to vector<4x8x1xf32>
    %51 = vector.broadcast %50 : vector<4x8x1xf32> to vector<4x8x8xf32>
    %52 = arith.subf %48, %51 : vector<4x8x8xf32>
    %53 = math.exp %52 : vector<4x8x8xf32>
    %cst_12 = arith.constant dense<0.000000e+00> : vector<4x8xf32>
    %54 = vector.multi_reduction <add>, %53, %cst_12 [2] : vector<4x8x8xf32> to vector<4x8xf32>
    %55 = vector.shape_cast %54 : vector<4x8xf32> to vector<4x8x1xf32>
    %56 = tpu.reciprocal %55 {approx = true} : vector<4x8x1xf32> -> vector<4x8x1xf32>
    %57 = vector.broadcast %56 : vector<4x8x1xf32> to vector<4x8x8xf32>
    %58 = arith.mulf %53, %57 : vector<4x8x8xf32>
    %59 = arith.truncf %58 : vector<4x8x8xf32> to vector<4x8x8xbf16>
    "tpu.trace_start"() <{level = 10 : i32, message = "hqk,hkd->hqd"}> : () -> ()
    %cst_13 = arith.constant dense<0.000000e+00> : vector<4x8x8xf32>
    %60 = tpu.matmul %59, %45, %cst_13 {dimension_numbers = #tpu.dot_dimension_numbers<[2], [1], [1], [2], [0, 0, 0, 1, 1, 2], [0], [0]>} : vector<4x8x8xbf16>, vector<4x8x8xbf16>, vector<4x8x8xf32> -> vector<4x8x8xf32>
    "tpu.trace_stop"() : () -> ()
    %61 = vector.extract_strided_slice %60 {offsets = [0, 0, 0], sizes = [1, 8, 8], strides = [1, 1, 1]} : vector<4x8x8xf32> to vector<1x8x8xf32>
    %62 = vector.shape_cast %61 : vector<1x8x8xf32> to vector<8x8xf32>
    %63 = vector.extract_strided_slice %60 {offsets = [1, 0, 0], sizes = [1, 8, 8], strides = [1, 1, 1]} : vector<4x8x8xf32> to vector<1x8x8xf32>
    %64 = vector.shape_cast %63 : vector<1x8x8xf32> to vector<8x8xf32>
    %65 = vector.extract_strided_slice %60 {offsets = [2, 0, 0], sizes = [1, 8, 8], strides = [1, 1, 1]} : vector<4x8x8xf32> to vector<1x8x8xf32>
    %66 = vector.shape_cast %65 : vector<1x8x8xf32> to vector<8x8xf32>
    %67 = vector.extract_strided_slice %60 {offsets = [3, 0, 0], sizes = [1, 8, 8], strides = [1, 1, 1]} : vector<4x8x8xf32> to vector<1x8x8xf32>
    %68 = vector.shape_cast %67 : vector<1x8x8xf32> to vector<8x8xf32>
    %69 = tpu.concatenate %62, %64, %66, %68 in 1 : vector<8x8xf32>, vector<8x8xf32>, vector<8x8xf32>, vector<8x8xf32> -> vector<8x32xf32>
    %70 = arith.truncf %69 : vector<8x32xf32> to vector<8x32xbf16>
    %c0_14 = arith.constant 0 : index
    %c0_15 = arith.constant 0 : index
    %71 = vector.load %arg5[%c0_14, %c0_15] : memref<32x32xbf16, #tpu.memory_space<vmem>>, vector<32x32xbf16>
    %cst_16 = arith.constant dense<0.000000e+00> : vector<8x32xf32>
    %72 = tpu.matmul %70, %71, %cst_16 {dimension_numbers = #tpu.dot_dimension_numbers<[1], [0], [0], [1], [0, 0, 1, 1], [], []>} : vector<8x32xbf16>, vector<32x32xbf16>, vector<8x32xf32> -> vector<8x32xf32>
    %c0_17 = arith.constant 0 : index
    %c0_18 = arith.constant 0 : index
    %73 = vector.load %arg6[%c0_17, %c0_18] : memref<1x32xf32, #tpu.memory_space<vmem>>, vector<1x32xf32>
    %74 = vector.broadcast %73 : vector<1x32xf32> to vector<8x32xf32>
    %75 = arith.addf %72, %74 : vector<8x32xf32>
    %76 = arith.addf %75, %1 : vector<8x32xf32>
    %c0_19 = arith.constant 0 : index
    %c0_20 = arith.constant 0 : index
    %77 = vector.load %arg7[%c0_19, %c0_20] : memref<1x32xf32, #tpu.memory_space<vmem>>, vector<1x32xf32>
    %c0_21 = arith.constant 0 : index
    %c0_22 = arith.constant 0 : index
    %78 = vector.load %arg8[%c0_21, %c0_22] : memref<1x32xf32, #tpu.memory_space<vmem>>, vector<1x32xf32>
    %cst_23 = arith.constant dense<0.000000e+00> : vector<8xf32>
    %79 = vector.multi_reduction <add>, %76, %cst_23 [1] : vector<8x32xf32> to vector<8xf32>
    %80 = vector.shape_cast %79 : vector<8xf32> to vector<8x1xf32>
    %cst_24 = arith.constant 3.200000e+01 : f32
    %81 = vector.broadcast %cst_24 : f32 to vector<8x1xf32>
    %82 = arith.divf %80, %81 : vector<8x1xf32>
    %83 = vector.broadcast %82 : vector<8x1xf32> to vector<8x32xf32>
    %84 = arith.subf %76, %83 : vector<8x32xf32>
    %85 = arith.mulf %84, %84 : vector<8x32xf32>
    %cst_25 = arith.constant dense<0.000000e+00> : vector<8xf32>
    %86 = vector.multi_reduction <add>, %85, %cst_25 [1] : vector<8x32xf32> to vector<8xf32>
    %87 = vector.shape_cast %86 : vector<8xf32> to vector<8x1xf32>
    %cst_26 = arith.constant 3.200000e+01 : f32
    %88 = vector.broadcast %cst_26 : f32 to vector<8x1xf32>
    %89 = arith.divf %87, %88 : vector<8x1xf32>
    %cst_27 = arith.constant 9.99999996E-13 : f32
    %90 = vector.broadcast %cst_27 : f32 to vector<8x1xf32>
    %91 = arith.addf %89, %90 : vector<8x1xf32>
    %92 = math.rsqrt %91 : vector<8x1xf32>
    %93 = vector.broadcast %92 : vector<8x1xf32> to vector<8x32xf32>
    %94 = arith.mulf %84, %93 : vector<8x32xf32>
    %95 = vector.broadcast %77 : vector<1x32xf32> to vector<8x32xf32>
    %96 = arith.mulf %94, %95 : vector<8x32xf32>
    %97 = vector.broadcast %78 : vector<1x32xf32> to vector<8x32xf32>
    %98 = arith.addf %96, %97 : vector<8x32xf32>
    %99 = arith.truncf %98 : vector<8x32xf32> to vector<8x32xbf16>
    %c0_28 = arith.constant 0 : index
    %c0_29 = arith.constant 0 : index
    %100 = vector.load %arg9[%c0_28, %c0_29] : memref<32x64xbf16, #tpu.memory_space<vmem>>, vector<32x64xbf16>
    %cst_30 = arith.constant dense<0.000000e+00> : vector<8x64xf32>
    %101 = tpu.matmul %99, %100, %cst_30 {dimension_numbers = #tpu.dot_dimension_numbers<[1], [0], [0], [1], [0, 0, 1, 1], [], []>} : vector<8x32xbf16>, vector<32x64xbf16>, vector<8x64xf32> -> vector<8x64xf32>
    %c0_31 = arith.constant 0 : index
    %c0_32 = arith.constant 0 : index
    %102 = vector.load %arg10[%c0_31, %c0_32] : memref<1x64xf32, #tpu.memory_space<vmem>>, vector<1x64xf32>
    %103 = vector.broadcast %102 : vector<1x64xf32> to vector<8x64xf32>
    %104 = arith.addf %101, %103 : vector<8x64xf32>
    %cst_33 = arith.constant 5.000000e-01 : f32
    %105 = vector.broadcast %cst_33 : f32 to vector<8x64xf32>
    %106 = arith.mulf %105, %104 : vector<8x64xf32>
    %cst_34 = arith.constant 4.471500e-02 : f32
    %107 = vector.broadcast %cst_34 : f32 to vector<8x64xf32>
    %108 = arith.mulf %107, %104 : vector<8x64xf32>
    %109 = arith.mulf %108, %104 : vector<8x64xf32>
    %110 = arith.mulf %109, %104 : vector<8x64xf32>
    %111 = arith.addf %104, %110 : vector<8x64xf32>
    %cst_35 = arith.constant 0.797884583 : f32
    %112 = vector.broadcast %cst_35 : f32 to vector<8x64xf32>
    %113 = arith.mulf %112, %111 : vector<8x64xf32>
    %114 = math.tanh %113 : vector<8x64xf32>
    %cst_36 = arith.constant 1.000000e+00 : f32
    %115 = vector.broadcast %cst_36 : f32 to vector<8x64xf32>
    %116 = arith.addf %115, %114 : vector<8x64xf32>
    %117 = arith.mulf %106, %116 : vector<8x64xf32>
    %118 = arith.truncf %117 : vector<8x64xf32> to vector<8x64xbf16>
    %c0_37 = arith.constant 0 : index
    %c0_38 = arith.constant 0 : index
    %119 = vector.load %arg11[%c0_37, %c0_38] : memref<64x32xbf16, #tpu.memory_space<vmem>>, vector<64x32xbf16>
    %cst_39 = arith.constant dense<0.000000e+00> : vector<8x32xf32>
    %120 = tpu.matmul %118, %119, %cst_39 {dimension_numbers = #tpu.dot_dimension_numbers<[1], [0], [0], [1], [0, 0, 1, 1], [], []>} : vector<8x64xbf16>, vector<64x32xbf16>, vector<8x32xf32> -> vector<8x32xf32>
    %c0_40 = arith.constant 0 : index
    %c0_41 = arith.constant 0 : index
    %121 = vector.load %arg12[%c0_40, %c0_41] : memref<1x32xf32, #tpu.memory_space<vmem>>, vector<1x32xf32>
    %122 = vector.broadcast %121 : vector<1x32xf32> to vector<8x32xf32>
    %123 = arith.addf %120, %122 : vector<8x32xf32>
    %124 = arith.addf %123, %98 : vector<8x32xf32>
    %c0_42 = arith.constant 0 : index
    %c0_43 = arith.constant 0 : index
    %125 = vector.load %arg13[%c0_42, %c0_43] : memref<1x32xf32, #tpu.memory_space<vmem>>, vector<1x32xf32>
    %c0_44 = arith.constant 0 : index
    %c0_45 = arith.constant 0 : index
    %126 = vector.load %arg14[%c0_44, %c0_45] : memref<1x32xf32, #tpu.memory_space<vmem>>, vector<1x32xf32>
    %cst_46 = arith.constant dense<0.000000e+00> : vector<8xf32>
    %127 = vector.multi_reduction <add>, %124, %cst_46 [1] : vector<8x32xf32> to vector<8xf32>
    %128 = vector.shape_cast %127 : vector<8xf32> to vector<8x1xf32>
    %cst_47 = arith.constant 3.200000e+01 : f32
    %129 = vector.broadcast %cst_47 : f32 to vector<8x1xf32>
    %130 = arith.divf %128, %129 : vector<8x1xf32>
    %131 = vector.broadcast %130 : vector<8x1xf32> to vector<8x32xf32>
    %132 = arith.subf %124, %131 : vector<8x32xf32>
    %133 = arith.mulf %132, %132 : vector<8x32xf32>
    %cst_48 = arith.constant dense<0.000000e+00> : vector<8xf32>
    %134 = vector.multi_reduction <add>, %133, %cst_48 [1] : vector<8x32xf32> to vector<8xf32>
    %135 = vector.shape_cast %134 : vector<8xf32> to vector<8x1xf32>
    %cst_49 = arith.constant 3.200000e+01 : f32
    %136 = vector.broadcast %cst_49 : f32 to vector<8x1xf32>
    %137 = arith.divf %135, %136 : vector<8x1xf32>
    %cst_50 = arith.constant 9.99999996E-13 : f32
    %138 = vector.broadcast %cst_50 : f32 to vector<8x1xf32>
    %139 = arith.addf %137, %138 : vector<8x1xf32>
    %140 = math.rsqrt %139 : vector<8x1xf32>
    %141 = vector.broadcast %140 : vector<8x1xf32> to vector<8x32xf32>
    %142 = arith.mulf %132, %141 : vector<8x32xf32>
    %143 = vector.broadcast %125 : vector<1x32xf32> to vector<8x32xf32>
    %144 = arith.mulf %142, %143 : vector<8x32xf32>
    %145 = vector.broadcast %126 : vector<1x32xf32> to vector<8x32xf32>
    %146 = arith.addf %144, %145 : vector<8x32xf32>
    %c0_51 = arith.constant 0 : index
    %c0_52 = arith.constant 0 : index
    %c0_53 = arith.constant 0 : index
    %147 = vector.load %arg15[%c0_51, %c0_52, %c0_53] : memref<1x8x32xf32, #tpu.memory_space<vmem>>, vector<1x8x32xf32>
    %148 = vector.shape_cast %147 : vector<1x8x32xf32> to vector<8x32xf32>
    %149 = vector.shape_cast %146 : vector<8x32xf32> to vector<1x8x32xf32>
    tpu.vector_store %arg15[%c0_51, %c0_52, %c0_53], %149 {strides = array<i32>} : memref<1x8x32xf32, #tpu.memory_space<vmem>>, vector<1x8x32xf32>,
    return
  }
  func.func @transform_0(%arg0: i32) -> (i32, i32, i32) {
    %c0_i32 = arith.constant 0 : i32
    %c0_i32_0 = arith.constant 0 : i32
    %c0_i32_1 = arith.constant 0 : i32
    return %arg0, %c0_i32, %c0_i32_0 : i32, i32, i32
  }
  func.func @transform_1(%arg0: i32) -> (i32, i32, i32) {
    %c0_i32 = arith.constant 0 : i32
    %c0_i32_0 = arith.constant 0 : i32
    %c0_i32_1 = arith.constant 0 : i32
    return %arg0, %c0_i32, %c0_i32_0 : i32, i32, i32
  }
  func.func @transform_2(%arg0: i32) -> (i32, i32) {
    %c0_i32 = arith.constant 0 : i32
    %c0_i32_0 = arith.constant 0 : i32
    %c0_i32_1 = arith.constant 0 : i32
    return %c0_i32, %c0_i32_0 : i32, i32
  }
  func.func @transform_3(%arg0: i32) -> (i32, i32) {
    %c0_i32 = arith.constant 0 : i32
    %c0_i32_0 = arith.constant 0 : i32
    %c0_i32_1 = arith.constant 0 : i32
    return %c0_i32, %c0_i32_0 : i32, i32
  }
  func.func @transform_4(%arg0: i32) -> (i32, i32) {
    %c0_i32 = arith.constant 0 : i32
    %c0_i32_0 = arith.constant 0 : i32
    %c0_i32_1 = arith.constant 0 : i32
    return %c0_i32, %c0_i32_0 : i32, i32
  }
  func.func @transform_5(%arg0: i32) -> (i32, i32) {
    %c0_i32 = arith.constant 0 : i32
    %c0_i32_0 = arith.constant 0 : i32
    %c0_i32_1 = arith.constant 0 : i32
    return %c0_i32, %c0_i32_0 : i32, i32
  }
  func.func @transform_6(%arg0: i32) -> (i32, i32) {
    %c0_i32 = arith.constant 0 : i32
    %c0_i32_0 = arith.constant 0 : i32
    %c0_i32_1 = arith.constant 0 : i32
    return %c0_i32, %c0_i32_0 : i32, i32
  }
  func.func @transform_7(%arg0: i32) -> (i32, i32) {
    %c0_i32 = arith.constant 0 : i32
    %c0_i32_0 = arith.constant 0 : i32
    %c0_i32_1 = arith.constant 0 : i32
    return %c0_i32, %c0_i32_0 : i32, i32
  }
  func.func @transform_8(%arg0: i32) -> (i32, i32) {
    %c0_i32 = arith.constant 0 : i32
    %c0_i32_0 = arith.constant 0 : i32
    %c0_i32_1 = arith.constant 0 : i32
    return %c0_i32, %c0_i32_0 : i32, i32
  }
  func.func @transform_9(%arg0: i32) -> (i32, i32) {
    %c0_i32 = arith.constant 0 : i32
    %c0_i32_0 = arith.constant 0 : i32
    %c0_i32_1 = arith.constant 0 : i32
    return %c0_i32, %c0_i32_0 : i32, i32
  }
  func.func @transform_10(%arg0: i32) -> (i32, i32) {
    %c0_i32 = arith.constant 0 : i32
    %c0_i32_0 = arith.constant 0 : i32
    %c0_i32_1 = arith.constant 0 : i32
    return %c0_i32, %c0_i32_0 : i32, i32
  }
  func.func @transform_11(%arg0: i32) -> (i32, i32) {
    %c0_i32 = arith.constant 0 : i32
    %c0_i32_0 = arith.constant 0 : i32
    %c0_i32_1 = arith.constant 0 : i32
    return %c0_i32, %c0_i32_0 : i32, i32
  }
  func.func @transform_12(%arg0: i32) -> (i32, i32) {
    %c0_i32 = arith.constant 0 : i32
    %c0_i32_0 = arith.constant 0 : i32
    %c0_i32_1 = arith.constant 0 : i32
    return %c0_i32, %c0_i32_0 : i32, i32
  }
  func.func @transform_13(%arg0: i32) -> (i32, i32) {
    %c0_i32 = arith.constant 0 : i32
    %c0_i32_0 = arith.constant 0 : i32
    %c0_i32_1 = arith.constant 0 : i32
    return %c0_i32, %c0_i32_0 : i32, i32
  }
  func.func @transform_14(%arg0: i32) -> (i32, i32, i32) {
    %c0_i32 = arith.constant 0 : i32
    %c0_i32_0 = arith.constant 0 : i32
    %c0_i32_1 = arith.constant 0 : i32
    return %arg0, %c0_i32, %c0_i32_0 : i32, i32, i32
  }
}

</mosaic_0001>

<bundles_post_ra>
// kernel: tpu_custom_call.1
= control target key start
LH: loop header
LB: loop body
LE: loop exit
PB: predicated region body
PF: predicated region fallthrough
CT: control target
= control target key end

     0   :  { %s2475_s0 = inlined_call_operand.vmem [shape: f32[2,8,32], index: 0, kind: input, shape index: {}]   ;;  %s2476_s1 = inlined_call_operand.hbm [shape: f32[2,1,8], index: 1, kind: input, shape index: {}]   ;;  %s2477_s2 = inlined_call_operand.vmem [shape: bf16[32,96], index: 2, kind: input, shape index: {}]   ;;  %s2478_s3 = inlined_call_operand.vmem [shape: f32[1,96], index: 3, kind: input, shape index: {}]   ;;  %s2479_s4 = inlined_call_operand.vmem [shape: bf16[32,32], index: 4, kind: input, shape index: {}]   ;;  %s2480_s5 = inlined_call_operand.vmem [shape: f32[1,32], index: 5, kind: input, shape index: {}]   ;;  %s2481_s6 = inlined_call_operand.hbm [shape: f32[1,32], index: 6, kind: input, shape index: {}]   ;;  %s2482_s7 = inlined_call_operand.hbm [shape: f32[1,32], index: 7, kind: input, shape index: {}]   ;;  %s2483_s8 = inlined_call_operand.hbm [shape: bf16[32,64], index: 8, kind: input, shape index: {}]   ;;  %s2484_s9 = inlined_call_operand.hbm [shape: f32[1,64], index: 9, kind: input, shape index: {}]   ;;  %s2485_s10 = inlined_call_operand.vmem [shape: bf16[64,32], index: 10, kind: input, shape index: {}]   ;;  %s2486_s11 = inlined_call_operand.vmem [shape: f32[1,32], index: 11, kind: input, shape index: {}]   ;;  %s2487_s12 = inlined_call_operand.vmem [shape: f32[1,32], index: 12, kind: input, shape index: {}]   ;;  %s2488_s13 = inlined_call_operand.vmem [shape: f32[1,32], index: 13, kind: input, shape index: {}]   ;;  %s2489_s14 = inlined_call_operand.hbm [shape: f32[2,8,32], index: 14, kind: output, shape index: {}]  }
   0x1   :  { %2499 = sst [smem:[#allocation21_spill]] %s2481_s6 }
   0x2   :  { %2500 = sst [smem:[#allocation22_spill]] %s2482_s7 }
   0x3   :  { %2501 = sst [smem:[#allocation23_spill]] %s2483_s8 }
   0x4   :  { %2502 = sst [smem:[#allocation24_spill]] %s2484_s9 }
   0x5   :  { %19 = vsyncpa [#allocation3], 0 }
   0x6   :  { %21 = vsyncpa [#allocation3 + $0x1], 0 }
   0x7   :  { %22 = vsyncpa [#allocation6], 0 }
   0x8   :  { %23 = vsyncpa [#allocation9], 0 }
   0x9   :  { %24 = vsyncpa [#allocation4], 0 }
   0xa   :  { %26 = vsyncpa [#allocation4 + $0x1], 0  ;;  %s2124_s29 = smov 0   ;;  %s2126_s30 = smov 0  }
   0xb   :  { %s2128_s15 = smov 0   ;;  %s2130_s16 = smov 0  }
   0xc LB: > { %2503 = sst [smem:[#allocation16_spill]] %s2025_s15  ;;  %s2031_s17 = smov [#allocation5]   ;;  %s2029_s16 = sphi %s2130_s16, %s2530_s16   ;;  %s2025_s15 = sphi %s2128_s15, %s2532_s15   ;;  %s2021_s30 = sphi %s2126_s30, %s2534_s30   ;;  %s2017_s29 = sphi %s2124_s29, %s2533_s29  }
   0xd   : > { %2504 = sst [smem:[#allocation17_spill]] %s2029_s16  ;;  %s392_s18 = sshll.u32 %s2031_s17, 4  ;;  %s393_s18 = int_to_ptr.vmem [resolvable:$true] %s392_s18 }
   0xe   : > { %s2145_s19 = sadd.s32 4294967295, %s2029_s16   ;;  %p1531_p0 = scmp.ge.s32.totalorder %s2029_s16, 1 }
   0xf   : > { %p2493_p1 = scmp.eq.s32.totalorder %s2145_s19, 0  ;;  %p367_p2 = scmp.lt.s32.totalorder %s2029_s16, 3 }
  0x10   : > { %s2032_s21 = smov [#allocation8]   ;;  %s2033_s24 = smov [#allocation7]  }
  0x11   : > { %p2150_p3 = pnand %p1531_p0, %p367_p2  ;;  %s413_s22 = sshll.u32 %s2032_s21, 4  ;;  %s2157_s22 = int_to_ptr.vmem [resolvable:$true] %s413_s22 }
  0x12   : > { %s403_s25 = sshll.u32 %s2033_s24, 4  ;;  %s1836_s26 = scalar_lea.vmem %s393_s18, 16  ;;  %s2165_s25 = int_to_ptr.vmem [resolvable:$true] %s403_s25 }
  0x13   : > { %s2505_s20 = scalar_select %p2150_p3, 1, 0 }
  0x14   : > { %p1714_p5 = pneg %p2150_p3  ;;  %p1837_p8 = scmp.ne.s32.totalorder %s393_s18, %s1836_s26 }
  0x15   : > { %s1843_s27 = scalar_lea.vmem %s393_s18, 32  ;;  %p1844_p11 = scmp.lt.s32.totalorder %s393_s18, %s393_s18 }
  0x16   : > { %p2161_p6 = pnand %p1714_p5, %p2493_p1  ;;  %p1845_p12 = scmp.lt.s32.totalorder %s1843_s27, %s1836_s26 }
  0x18   : > { %p1827_p7 = pneg %p2161_p6  ;;  %p1846_p13 = por %p1845_p12, %p1844_p11 }
  0x1a   : > { %p1839_p9 = pnand %p1837_p8, %p1827_p7 }
  0x1c   : > { %p1840_p10 = pneg %p1839_p9 }
  0x1e   : > { %p1847_p0 = pnand %p1846_p13, %p1840_p10 }
  0x20   : > { %1850 = shalt.err (!%p1847_p0)
}
  0x21   : > { %s2507_s6 = sld [smem:[#allocation21_spill]]  ;;  %s1862_s21 = scalar_lea.vmem %s2157_s22, 256 }
  0x22   : > { %p1863_p2 = scmp.ne.s32.totalorder %s2157_s22, %s1862_s21  ;;  %p1870_p9 = scmp.lt.s32.totalorder %s2157_s22, %s2157_s22 }
  0x23   : > { %p1871_p10 = scmp.lt.s32.totalorder %s1862_s21, %s1862_s21 }
  0x24   : > { %p1865_p5 = pnand %p1863_p2, %p1827_p7 }
  0x25   : > { %p1872_p11 = por %p1871_p10, %p1870_p9 }
  0x26   : > { %p1866_p8 = pneg %p1865_p5 }
  0x27   : > { %1717 = dma.hbm_to_vmem [thread:$0]  (!%p2161_p6), %s2507_s6, 16, %s393_s18, [#allocation6]  }
  0x28   : > { %p1873_p12 = pnand %p1872_p11, %p1866_p8 }
  0x2a   : > { %1876 = shalt.err (!%p1873_p12)
}
  0x2b   : > { %s2034_s24 = smov 64   ;;  %s2035_s18 = smov 4  }
  0x2c   : > { %s2508_s8 = sld [smem:[#allocation23_spill]]  ;;  %s1888_s28 = scalar_lea.vmem %s2165_s25, 16 }
  0x2d   : > { %p1889_p13 = scmp.ne.s32.totalorder %s2165_s25, %s1888_s28  ;;  %s1895_s17 = scalar_lea.vmem %s2165_s25, 32 }
  0x2e   : > { %p1896_p5 = scmp.lt.s32.totalorder %s2165_s25, %s2165_s25  ;;  %p1897_p8 = scmp.lt.s32.totalorder %s1895_s17, %s1888_s28 }
  0x2f   : > { %p1891_p0 = pnand %p1889_p13, %p1827_p7 }
  0x30   : > { %p1898_p9 = por %p1897_p8, %p1896_p5 }
  0x31   : > { %p1892_p2 = pneg %p1891_p0 }
  0x32   : > { %1723 = dma.hbm_to_vmem [thread:$0]  (!%p2161_p6), %s2508_s8, 256, %s2157_s22, [#allocation9], %s2034_s24, %s2034_s24, %s2035_s18  }
  0x33   : > { %p1899_p10 = pnand %p1898_p9, %p1892_p2 }
  0x35   : > { %1902 = shalt.err (!%p1899_p10)
}
  0x36   : > { %s2509_s7 = sld [smem:[#allocation22_spill]]  ;;  %s2036_s22 = smov [#allocation10]  }
  0x37   : > { %s427_s24 = sshll.u32 %s2036_s22, 4  ;;  %s428_s24 = int_to_ptr.vmem [resolvable:$true] %s427_s24 }
  0x38   : > { %s1914_s18 = scalar_lea.vmem %s428_s24, 16  ;;  %s1921_s26 = scalar_lea.vmem %s428_s24, 32 }
  0x39   : > { %p1915_p11 = scmp.ne.s32.totalorder %s428_s24, %s1914_s18  ;;  %p1922_p0 = scmp.lt.s32.totalorder %s428_s24, %s428_s24 }
  0x3a   : > { %p1923_p2 = scmp.lt.s32.totalorder %s1921_s26, %s1914_s18 }
  0x3b   : > { %p1917_p12 = pnand %p1915_p11, %p1827_p7 }
  0x3c   : > { %1720 = dma.hbm_to_vmem [thread:$0]  (!%p2161_p6), %s2509_s7, 16, %s2165_s25, [#allocation6]  }
  0x3d   : > { %p1918_p13 = pneg %p1917_p12  ;;  %p1924_p5 = por %p1923_p2, %p1922_p0 }
  0x3f   : > { %p1925_p8 = pnand %p1924_p5, %p1918_p13 }
  0x41   : > { %1928 = shalt.err (!%p1925_p8)
}
  0x42   : > { %s2510_s9 = sld [smem:[#allocation24_spill]]  ;;  %s1530_s25 = sadd.s32 4294967294, %s2029_s16  }
  0x43   : > { %s2214_s23 = sadd.s32 1, %s2029_s16   ;;  %s65_s17 = sadd.s32 1, %s2025_s15 }
  0x44   : > { %2511 = sst [smem:[#allocation18_spill]] %s2214_s23  ;;  %s62_s28 = ssub.s32 %s2029_s16, %s2214_s23 }
  0x45   : > { %p63_p7 = scmp.eq.s32.totalorder %s62_s28, 0  ;;  %p72_p9 = scmp.ne.s32.totalorder %s2025_s15, %s2021_s30 }
  0x46   : > { %p73_p10 = scmp.eq.s32.totalorder %s2029_s16, 0  ;;  %p78_p11 = scmp.ne.s32.totalorder %s2021_s30, %s2017_s29 }
  0x47   : > { %s2225_s21 = scalar_select %p63_p7, %s2025_s15, %s65_s17  }
  0x48   : > { %1726 = dma.hbm_to_vmem [thread:$0]  (!%p2161_p6), %s2510_s9, 16, %s428_s24, [#allocation9]  }
  0x49   : > { %2512 = sst [smem:[#allocation19_spill]] %s2225_s21  ;;  %p2227_p12 = por %p73_p10, %p72_p9 }
  0x4a   : > { %p2233_p6 = por %p2493_p1, %p78_p11  ;;  %p354_p13 = scmp.eq.s32.totalorder %s2145_s19, 1 }
  0x4b   : > { %p360_p0 = scmp.eq.s32.totalorder %s1530_s25, 1  ;;  %p1739_p2 = scmp.lt.s32.totalorder %s2029_s16, 2 }
  0x4c   : > { %s2514_s24 = scalar_select %p2233_p6, 1, 0 }
  0x4d   : > { %s457_s18 = sand.u32 1, %s2025_s15   ;;  %p2240_p5 = por %p354_p13, %p72_p9 }
  0x4e   : > { %p2244_p8 = por %p360_p0, %p78_p11  ;;  %s1537_s27 = sshll.u32 %s2029_s16, 4 }
  0x4f   : > { %s2515_s26 = scalar_select %p2240_p5, 1, 0 }
  0x50   : > { %s2516_s6 = scalar_select %p2244_p8, 1, 0 }
  0x51   : > { %s460_s28 = scalar_lea.vmem [#allocation2], %s457_s18  ;;  %s2252_s9 = scalar_lea.hbm %s2476_s1, %s1537_s27 }
  0x52   : > { %2517 = sst [smem:[#allocation20_spill]] %s2516_s6  ;;  %s467_s17 = sshll.u32 %s460_s28, 4  ;;  %s468_s17 = int_to_ptr.vmem [resolvable:$true] %s467_s17 }
  0x53   : > { %p2256_p7 = pnand %p1739_p2, %p2227_p12  ;;  %s458_s21 = scalar_lea.sflag [#allocation3], %s457_s18 }
  0x54   : > { %s1929_s15 = scalar_lea.hbm %s2252_s9, 16  ;;  %s1934_s27 = scalar_lea.hbm %s2476_s1, 32 }
  0x55   : > { %p1930_p9 = scmp.ne.s32.totalorder %s2252_s9, %s1929_s15  ;;  %p1931_p10 = pneg %p2256_p7 }
  0x56   : > { %p1935_p0 = scmp.lt.s32.totalorder %s2252_s9, %s2476_s1  ;;  %p1936_p12 = scmp.lt.s32.totalorder %s1934_s27, %s1929_s15 }
  0x57   : > { %p1932_p11 = pnand %p1931_p10, %p1930_p9 }
  0x58   : > { %p1937_p2 = por %p1936_p12, %p1935_p0 }
  0x59   : > { %p1933_p13 = pneg %p1932_p11 }
  0x5b   : > { %p1938_p4 = pnand %p1937_p2, %p1933_p13 }
  0x5d   : > { %1941 = shalt.err (!%p1938_p4)
}
  0x5e   : > { %s1942_s22 = scalar_lea.vmem %s468_s17, 16  ;;  %s2037_s18 = smov [#allocation2]  }
  0x5f   : > { %p1943_p1 = scmp.ne.s32.totalorder %s468_s17, %s1942_s22  ;;  %s1947_s16 = sshll.u32 %s2037_s18, 4  ;;  %s1948_s16 = int_to_ptr.vmem [resolvable:$false] %s1947_s16 }
  0x60   : > { %s1949_s6 = scalar_lea.vmem %s1948_s16, 32  ;;  %p1950_p9 = scmp.lt.s32.totalorder %s468_s17, %s1948_s16 }
  0x61   : > { %p1945_p8 = pnand %p1943_p1, %p1931_p10  ;;  %p1951_p11 = scmp.lt.s32.totalorder %s1949_s6, %s1942_s22 }
  0x63   : > { %p1946_p5 = pneg %p1945_p8  ;;  %p1952_p6 = por %p1951_p11, %p1950_p9 }
  0x65   : > { %p1953_p3 = pnand %p1952_p6, %p1946_p5 }
  0x67   : > { %1956 = shalt.err (!%p1953_p3)
}
  0x68   : > { %1730 = dma.hbm_to_vmem [thread:$0]  (!%p2256_p7), %s2252_s9, 16, %s468_s17, %s458_s21  }
  0x69   : > { %p2519_p13 = scmp.ne.s32.totalorder %s2505_s20, 0 }
  0x6a   : > { %s2277_s15 = sand.u32 (!%p2519_p13), 1, %s2021_s30   ;;  %p2520_p1 = scmp.ne.s32.totalorder (!%p2519_p13), %s2514_s24, 0 }
  0x6b   : > { %476 = sbr.rel (%p2519_p13) target bundleno = 2642 (0xa52), region = 76  ;;  %s479_s23 = scalar_lea.sflag (!%p2519_p13), [#allocation3], %s2277_s15 }
  0x6c   : > { %s481_s7 = scalar_lea.vmem (!%p2519_p13), [#allocation2], %s2277_s15 }
  0x70   : > { %2000 = dma.done.wait (%p2520_p1), %s479_s23, 16  }
  0x71   : > { %2002 = vsyncadd (%p2520_p1), %s479_s23, 4294967280  ;;  %p2521_p3 = scmp.eq.s32.totalorder %s2145_s19, 0 }
  0x73   : > { %2004 = dma.done.wait (%p2521_p3), [#allocation6], 32   ;;  %p2522_p4 = pmov %p2521_p3 }
  0x74   : > { %p2523_p6 = pmov %p2521_p3 }
  0x75   : > { %2006 = vsyncadd (%p2522_p4), [#allocation6], 4294967264 }
  0x76   : > { %2008 = dma.done.wait (%p2523_p6), [#allocation9], 272   ;;  %p2524_p5 = pmov %p2521_p3 }
  0x77   : > { %p545_p8 = scmp.lt.s32.totalorder %s2145_s19, 1  ;;  %v2038_v0 = vmov 0.0   ;;  %vm2039_vm0 = vmmov 0   ;;  %v1793_v1 = vld [vmem:[%s2477_s2 + $0x8] sm:$0xff]   ;;  %v1794_v2 = vld [vmem:[%s2477_s2] sm:$0xff]   ;;  %vm576_vm1 = vcmask 261120  }
  0x78   : > { %2010 = vsyncadd (%p2524_p5), [#allocation9], 4294967024  ;;  %1610 = vmatprep.subr.bf16.mxu0 %v2038_v0  ;;  %1614 = vmatprep.mubr.msk.bf16.mxu0 %vm2039_vm0, %v2038_v0  ;;  %v1545_v5 = vld [vmem:[%s2478_s3] ss:$0 sm:$0xff]  ;;  %s2040_s22 = smov 104   ;;  %s2041_s18 = smov 120  }
  0x79   : > { %s546_s9 = scalar_select %p545_p8, %s2145_s19, 1  ;;  %1618 = vmatprep.subr.bf16.mxu1 %v2038_v0  ;;  %1620 = vmatprep.mubr.msk.bf16.mxu1 %vm2039_vm0, %v2038_v0  ;;  %vm658_vm2 = vcmask 64512   ;;  %v1549_v34 = vld [vmem:[%s481_s7] ss:$0 sm:$0xff]  ;;  %vm905_vm3 = vcmask 1043456   ;;  %vm1106_vm4 = vcmask 130048  }
  0x7a   : > { %1611 = vmatpush3.bf16.msra.mxu0 %v1793_v1  ;;  %s2042_s23 = smov 112   ;;  %s2044_s7 = smov 64   ;;  %vm1108_vm5 = vcmask 195584   ;;  %vm1324_vm6 = vcmask 523264  }
  0x7b   : > { %s1544_s16 = sshll.u32 %s546_s9, 3  ;;  %1612 = vmatprep.subr.bf16.mxu0 %v2038_v0  ;;  %s2043_s9 = smov 96  }
  0x7c   : > { %s548_s24 = scalar_lea.vmem %s2475_s0, %s1544_s16  ;;  %s2045_s6 = smov 8  }
  0x7d   : > { %v2310_v3 = vld [vmem:[%s548_s24] sm:$0xff]  ;;  %s2046_s17 = smov 16   ;;  %s2047_s25 = smov 24  }
  0x7e   : > { %v552_v4 = vpack.c.bf16 %v2310_v3, %v2310_v3  ;;  %1613 = vmatpush3.bf16.msra.mxu0 %v1794_v2  ;;  %s1577_s28 = sshll.u32 %s2145_s19, 7  ;;  %s1400_s16 = scalar_lea.sflag [#allocation4], %s2277_s15 }
  0x7f   : > { %1624 = vmatprep.subr.bf16.mxu0 %v2038_v0  ;;  %p2525_p10 = scmp.ne.s32.totalorder %s2515_s26, 0  ;;  %s2048_s21 = smov [#allocation11]  }
  0x80   : > { %s1961_s24 = sshll.u32 %s2048_s21, 4  ;;  %s1962_s24 = int_to_ptr.vmem [resolvable:$false] %s1961_s24 }
  0x81   : > { %1615 = vmatmul.mubr.msk.bf16.vlgmr.msra.gmra.mxu0 %vm576_vm1, %v552_v4  ;;  %s1963_s19 = scalar_lea.vmem %s1962_s24, 256 }
  0x82   : > { %1626 = vmatprep.mubr.msk.bf16.mxu0 %vm2039_vm0, %v2038_v0 }
 0x141   : > { %v614_v6 = vpop.f32.mrf.mxu0 }
 0x142   : > { %v615_v7 = vadd.f32 %v1545_v5, %v614_v6 }
 0x143   : > { %v1616_v8 = vpop.f32.mrf.mxu0 }
 0x144   : > { %642 = vrot.lane.b32.xlu1 %v615_v7, %s2040_s22  ;;  %636 = vrot.lane.b32.xlu0 %v615_v7, %s2041_s18  ;;  %v2322_v10 = vpack.c.bf16 %v615_v7, %v615_v7  ;;  %v620_v12 = vmul.f32 0.35355338, %v615_v7 }
 0x145   : > { %v617_v9 = vpop.f32.mrf.mxu0 }
 0x146   : > { %v631_v21 = vpack.c.bf16 %v620_v12, %v620_v12 }
 0x147   : > { %v1617_v11 = vpop.f32.mrf.mxu0 }
 0x148   : > { %639 = vrot.lane.b32.xlu0 %v615_v7, %s2042_s23  ;;  %656 = vrot.lane.b32.xlu1 %v2322_v10, %s2043_s9 }
 0x14c   : > { %622 = vrot.lane.b32.xlu1 %v620_v12, %s2041_s18 }
 0x1b6   : > { %v643_v13 = vpop.permute.xlu1 %642  ;;  %v637_v14 = vpop.permute.xlu0 %636 }
 0x1b7   : > { %v2325_v15 = vpack.c.bf16 %v643_v13, %v643_v13  ;;  %v2327_v16 = vpack.c.bf16 %v637_v14, %v637_v14 }
 0x1b9   : > { %706 = vrot.lane.b32.xlu0 %v2327_v16, %s2043_s9  ;;  %804 = vrot.lane.b32.xlu1 %v2325_v15, %s2043_s9 }
 0x1ba   : > { %v640_v17 = vpop.permute.xlu0 %639  ;;  %v657_v18 = vpop.permute.xlu1 %656 }
 0x1bb   : > { %v2331_v19 = vpack.c.bf16 %v640_v17, %v640_v17  ;;  %v663_v20 = vsel %vm658_vm2, %v657_v18, 0 }
 0x1bc   : > { %1619 = vmatpush3.bf16.xpose.msra.mxu1 %v663_v20 }
 0x1bd   : > { %755 = vrot.lane.b32.xlu0 %v2331_v19, %s2043_s9  ;;  %628 = vrot.lane.b32.xlu1 %v620_v12, %s2040_s22 }
 0x1be   : > { %1630 = vmatprep.subr.bf16.mxu1 %v2038_v0  ;;  %v623_v24 = vpop.permute.xlu1 %622 }
 0x1bf   : > { %v632_v28 = vpack.c.bf16 %v623_v24, %v623_v24 }
 0x1c1   : > { %625 = vrot.lane.b32.xlu0 %v620_v12, %s2042_s23 }
 0x1c3   : > { %1621 = vmatmul.mubr.msk.bf16.vlgmr.msra.gmra.mxu1 %vm658_vm2, %v631_v21 }
 0x1c4   : > { %1632 = vmatprep.mubr.msk.bf16.mxu1 %vm2039_vm0, %v2038_v0 }
 0x22b   : > { %v707_v22 = vpop.permute.xlu0 %706  ;;  %v805_v27 = vpop.permute.xlu1 %804 }
 0x22c   : > { %v712_v23 = vsel %vm658_vm2, %v707_v22, 0  ;;  %v810_v30 = vsel %vm658_vm2, %v805_v27, 0 }
 0x22d   : > { %1625 = vmatpush3.bf16.xpose.msra.mxu0 %v712_v23 }
 0x22e   : > { %1636 = vmatprep.subr.bf16.mxu0 %v2038_v0 }
 0x22f   : > { %v756_v25 = vpop.permute.xlu0 %755  ;;  %v629_v32 = vpop.permute.xlu1 %628 }
 0x230   : > { %v761_v26 = vsel %vm658_vm2, %v756_v25, 0  ;;  %v634_v33 = vpack.c.bf16 %v629_v32, %v629_v32 }
 0x231   : > { %1631 = vmatpush3.bf16.xpose.msra.mxu1 %v761_v26 }
 0x232   : > { %1642 = vmatprep.subr.bf16.mxu1 %v2038_v0 }
 0x233   : > { %v626_v29 = vpop.permute.xlu0 %625 }
 0x234   : > { %1627 = vmatmul.mubr.msk.bf16.vlgmr.msra.gmra.mxu0 %vm658_vm2, %v632_v28  ;;  %v633_v31 = vpack.c.bf16 %v626_v29, %v626_v29 }
 0x235   : > { %1637 = vmatpush3.bf16.xpose.msra.mxu0 %v810_v30  ;;  %1638 = vmatprep.mubr.msk.bf16.mxu0 %vm2039_vm0, %v2038_v0 }
 0x236   : > { %1648 = vmatprep.subr.bf16.mxu0 %v2038_v0 }
 0x238   : > { %1633 = vmatmul.mubr.msk.bf16.vlgmr.msra.gmra.mxu1 %vm658_vm2, %v633_v31 }
 0x239   : > { %1644 = vmatprep.mubr.msk.bf16.mxu1 %vm2039_vm0, %v2038_v0 }
 0x23c   : > { %1639 = vmatmul.mubr.msk.bf16.vlgmr.msra.gmra.mxu0 %vm658_vm2, %v634_v33 }
 0x23d   : > { %1650 = vmatprep.mubr.msk.bf16.mxu0 %vm2039_vm0, %v2038_v0 }
 0x283   : > { %v699_v35 = vpop.f32.mrf.mxu1 }
 0x284   : > { %v700_v36 = vadd.f32 %v1549_v34, %v699_v35 }
 0x285   : > { %v1622_v37 = vpop.f32.mrf.mxu1 }
 0x286   : > { %v852_v38 = vsel %vm658_vm2, %v700_v36, -inf }
 0x287   : > { %853 = vmax.xlane.f32.xlu0 %v852_v38  ;;  %v702_v39 = vpop.f32.mrf.mxu1 }
 0x289   : > { %v1623_v40 = vpop.f32.mrf.mxu1 }
 0x2f4   : > { %v748_v41 = vpop.f32.mrf.mxu0 }
 0x2f5   : > { %v749_v42 = vadd.f32 %v1549_v34, %v748_v41 }
 0x2f6   : > { %v1628_v43 = vpop.f32.mrf.mxu0 }
 0x2f7   : > { %v855_v44 = vsel %vm658_vm2, %v749_v42, -inf }
 0x2f8   : > { %v797_v45 = vpop.f32.mrf.mxu1  ;;  %856 = vmax.xlane.f32.xlu1 %v855_v44  ;;  %v751_v46 = vpop.f32.mrf.mxu0 }
 0x2f9   : > { %v798_v47 = vadd.f32 %v1549_v34, %v797_v45  ;;  %v1795_v45 = vld [vmem:[%s2479_s4 + $0x8] sm:$0xff]   ;;  %v1796_v46 = vld [vmem:[%s2479_s4] sm:$0xff]  }
 0x2fa   : > { %v1629_v48 = vpop.f32.mrf.mxu0  ;;  %v1634_v49 = vpop.f32.mrf.mxu1 }
 0x2fb   : > { %v858_v50 = vsel %vm658_vm2, %v798_v47, -inf }
 0x2fc   : > { %859 = vmax.xlane.f32.xlu0 %v858_v50  ;;  %v800_v51 = vpop.f32.mrf.mxu1  ;;  %v846_v52 = vpop.f32.mrf.mxu0 }
 0x2fd   : > { %v847_v53 = vadd.f32 %v1549_v34, %v846_v52 }
 0x2fe   : > { %v1635_v54 = vpop.f32.mrf.mxu1  ;;  %v1640_v55 = vpop.f32.mrf.mxu0 }
 0x2ff   : > { %v861_v56 = vsel %vm658_vm2, %v847_v53, -inf }
 0x300   : > { %862 = vmax.xlane.f32.xlu0 %v861_v56  ;;  %v849_v57 = vpop.f32.mrf.mxu0 }
 0x302   : > { %v1641_v58 = vpop.f32.mrf.mxu0 }
 0x309   : > { %900 = vrot.lane.b32.xlu1 %v2322_v10, %s2044_s7 }
 0x310   : > { %v854_v59 = vpop.xlane.xlu0 %853 }
 0x311   : > { %v864_v60 = vsub.f32 %v700_v36, %v854_v59 }
 0x313   : > { %v868_v61 = vmul.f32 1.442695, %v864_v60 }
 0x315   : > { %1803 = vpow2.f32 %v868_v61 }
 0x322   : > { %v1804_v62 = vpop.eup %1803 }
 0x323   : > { %v876_v63 = vsel %vm658_vm2, %v1804_v62, 0.0 }
 0x32d   : > { %877 = vadd.xlane.f32.xlu1 %v876_v63 }
 0x381   : > { %v857_v1 = vpop.xlane.xlu1 %856 }
 0x382   : > { %v865_v2 = vsub.f32 %v749_v42, %v857_v1 }
 0x384   : > { %v870_v4 = vmul.f32 1.442695, %v865_v2 }
 0x385   : > { %v860_v5 = vpop.xlane.xlu0 %859  ;;  %v901_v6 = vpop.permute.xlu1 %900 }
 0x386   : > { %1805 = vpow2.f32 %v870_v4  ;;  %v866_v7 = vsub.f32 %v798_v47, %v860_v5  ;;  %v907_v8 = vsel %vm905_vm3, %v901_v6, 0  ;;  %v1558_v4 = vld [vmem:[%s2480_s5] ss:$0 sm:$0xff] }
 0x387   : > { %1643 = vmatpush3.bf16.msra.mxu1 %v907_v8 }
 0x388   : > { %v872_v9 = vmul.f32 1.442695, %v866_v7  ;;  %1654 = vmatprep.subr.bf16.mxu1 %v2038_v0 }
 0x389   : > { %v863_v10 = vpop.xlane.xlu0 %862 }
 0x38a   : > { %1807 = vpow2.f32 %v872_v9  ;;  %v867_v11 = vsub.f32 %v847_v53, %v863_v10 }
 0x38c   : > { %v874_v12 = vmul.f32 1.442695, %v867_v11 }
 0x38e   : > { %1809 = vpow2.f32 %v874_v12 }
 0x393   : > { %v1806_v13 = vpop.eup %1805 }
 0x394   : > { %v879_v14 = vsel %vm658_vm2, %v1806_v13, 0.0 }
 0x395   : > { %880 = vadd.xlane.f32.xlu0 %v879_v14 }
 0x397   : > { %v1808_v17 = vpop.eup %1807 }
 0x398   : > { %v882_v18 = vsel %vm658_vm2, %v1808_v17, 0.0 }
 0x399   : > { %883 = vadd.xlane.f32.xlu1 %v882_v18 }
 0x39b   : > { %v1810_v20 = vpop.eup %1809 }
 0x39c   : > { %v885_v21 = vsel %vm658_vm2, %v1810_v20, 0.0 }
 0x39d   : > { %886 = vadd.xlane.f32.xlu0 %v885_v21  ;;  %v1798_v21 = vld [vmem:[#allocation8] sm:$0xff]  }
 0x3aa   : > { %997 = vrot.lane.b32.xlu1 %v2331_v19, %s2044_s7 }
 0x3ae   : > { %1045 = vrot.lane.b32.xlu1 %v2325_v15, %s2044_s7 }
 0x3b3   : > { %949 = vrot.lane.b32.xlu0 %v2327_v16, %s2044_s7  ;;  %s1411_s7 = scalar_lea.hbm %s2489_s14, %s1577_s28 }
 0x3b6   : > { %v878_v22 = vpop.xlane.xlu1 %877 }
 0x3b7   : > { %1811 = vrcp.f32 %v878_v22 }
 0x3c4   : > { %v1812_v23 = vpop.eup %1811 }
 0x3c5   : > { %v892_v24 = vmul.f32 %v1812_v23, %v1804_v62 }
 0x3c7   : > { %v896_v25 = vpack.c.bf16 %v892_v24, %v892_v24 }
 0x3c9   : > { %1645 = vmatmul.mubr.msk.bf16.vlgmr.msra.gmra.mxu1 %vm658_vm2, %v896_v25  ;;  %v1562_v25 = vld [vmem:[#allocation5] ss:$0 sm:$0xff] }
 0x3ca   : > { %1656 = vmatprep.mubr.msk.bf16.mxu1 %vm2039_vm0, %v2038_v0 }
 0x41e   : > { %v881_v26 = vpop.xlane.xlu0 %880 }
 0x41f   : > { %1813 = vrcp.f32 %v881_v26 }
 0x422   : > { %v884_v27 = vpop.xlane.xlu1 %883 }
 0x423   : > { %1815 = vrcp.f32 %v884_v27  ;;  %v1563_v27 = vld [vmem:[#allocation7] ss:$0 sm:$0xff] }
 0x426   : > { %v998_v19 = vpop.permute.xlu1 %997  ;;  %v887_v28 = vpop.xlane.xlu0 %886 }
 0x427   : > { %v1003_v15 = vsel %vm905_vm3, %v998_v19, 0  ;;  %1817 = vrcp.f32 %v887_v28 }
 0x428   : > { %1655 = vmatpush3.bf16.msra.mxu1 %v1003_v15 }
 0x429   : > { %1666 = vmatprep.subr.bf16.mxu1 %v2038_v0 }
 0x42a   : > { %v950_v16 = vpop.permute.xlu0 %949  ;;  %v1046_v32 = vpop.permute.xlu1 %1045 }
 0x42b   : > { %v955_v29 = vsel %vm905_vm3, %v950_v16, 0  ;;  %v1051_v35 = vsel %vm905_vm3, %v1046_v32, 0  ;;  %v1799_v16 = vld [vmem:[%s2485_s10 + $0x18] sm:$0xff]   ;;  %v1564_v32 = vld [vmem:[#allocation10] ss:$0 sm:$0xff] }
 0x42c   : > { %v1814_v30 = vpop.eup %1813  ;;  %1649 = vmatpush3.bf16.msra.mxu0 %v955_v29  ;;  %v1800_v29 = vld [vmem:[%s2485_s10 + $0x10] sm:$0xff]  }
 0x42d   : > { %1660 = vmatprep.subr.bf16.mxu0 %v2038_v0  ;;  %v893_v31 = vmul.f32 %v1814_v30, %v1806_v13  ;;  %v1801_v30 = vld [vmem:[%s2485_s10 + $0x8] sm:$0xff]  }
 0x42f   : > { %v897_v33 = vpack.c.bf16 %v893_v31, %v893_v31  ;;  %v1802_v31 = vld [vmem:[%s2485_s10] sm:$0xff]  }
 0x430   : > { %v1816_v34 = vpop.eup %1815 }
 0x431   : > { %1651 = vmatmul.mubr.msk.bf16.vlgmr.msra.gmra.mxu0 %vm658_vm2, %v897_v33  ;;  %v894_v36 = vmul.f32 %v1816_v34, %v1808_v17 }
 0x432   : > { %1661 = vmatpush3.bf16.msra.mxu0 %v1051_v35  ;;  %1662 = vmatprep.mubr.msk.bf16.mxu0 %vm2039_vm0, %v2038_v0 }
 0x433   : > { %v898_v37 = vpack.c.bf16 %v894_v36, %v894_v36  ;;  %1674 = vmatprep.subr.bf16.mxu0 %v2038_v0 }
 0x434   : > { %v1818_v38 = vpop.eup %1817 }
 0x435   : > { %1657 = vmatmul.mubr.msk.bf16.vlgmr.msra.gmra.mxu1 %vm658_vm2, %v898_v37  ;;  %v895_v39 = vmul.f32 %v1818_v38, %v1810_v20  ;;  %v1797_v20 = vld [vmem:[#allocation8 + $0x8] sm:$0xff]  }
 0x436   : > { %1670 = vmatprep.mubr.msk.bf16.mxu1 %vm2039_vm0, %v2038_v0  ;;  %1667 = vmatpush3.bf16.msra.mxu1 %v1795_v45 }
 0x437   : > { %v899_v40 = vpack.c.bf16 %v895_v39, %v895_v39  ;;  %1668 = vmatprep.subr.bf16.mxu1 %v2038_v0 }
 0x439   : > { %1663 = vmatmul.mubr.msk.bf16.vlgmr.msra.gmra.mxu0 %vm658_vm2, %v899_v40 }
 0x43a   : > { %1678 = vmatprep.mubr.msk.bf16.mxu0 %vm2039_vm0, %v2038_v0  ;;  %1669 = vmatpush3.bf16.msra.mxu1 %v1796_v46 }
 0x43b   : > { %1682 = vmatprep.subr.bf16.mxu1 %v2038_v0  ;;  %1675 = vmatpush3.bf16.msra.mxu0 %v1797_v20 }
 0x43c   : > { %1676 = vmatprep.subr.bf16.mxu0 %v2038_v0 }
 0x43f   : > { %1677 = vmatpush3.bf16.msra.mxu0 %v1798_v21 }
 0x489   : > { %v943_v41 = vpop.f32.mrf.mxu1 }
 0x48b   : > { %v1646_v42 = vpop.f32.mrf.mxu1 }
 0x48d   : > { %v946_v43 = vpop.f32.mrf.mxu1 }
 0x48f   : > { %v1647_v44 = vpop.f32.mrf.mxu1 }
 0x4f1   : > { %v991_v47 = vpop.f32.mrf.mxu0 }
 0x4f2   : > { %1094 = vrot.lane.b32.xlu0 %v991_v47, %s2045_s6  ;;  %s1543_s6 = sshll.u32 %s2277_s15, 3 }
 0x4f3   : > { %v1652_v48 = vpop.f32.mrf.mxu0  ;;  %s544_s22 = scalar_lea.vmem [#allocation11], %s1543_s6 }
 0x4f4   : > { %s1413_s18 = sshll.u32 %s544_s22, 4  ;;  %s1414_s18 = int_to_ptr.vmem [resolvable:$true] %s1413_s18 }
 0x4f5   : > { %v994_v49 = vpop.f32.mrf.mxu0  ;;  %v1039_v50 = vpop.f32.mrf.mxu1  ;;  %s1957_s20 = scalar_lea.vmem %s1414_s18, 128  ;;  %p1964_p2 = scmp.lt.s32.totalorder %s1414_s18, %s1962_s24 }
 0x4f6   : > { %1098 = vrot.lane.b32.xlu1 %v1039_v50, %s2046_s17  ;;  %p1958_p7 = scmp.ne.s32.totalorder %s1414_s18, %s1957_s20  ;;  %p1965_p9 = scmp.lt.s32.totalorder %s1963_s19, %s1957_s20 }
 0x4f7   : > { %v1653_v51 = vpop.f32.mrf.mxu0  ;;  %v1658_v52 = vpop.f32.mrf.mxu1 }
 0x4f8   : > { %p1959_p0 = pnand %p1958_p7, %p2525_p10  ;;  %p1966_p11 = por %p1965_p9, %p1964_p2 }
 0x4f9   : > { %v1042_v53 = vpop.f32.mrf.mxu1  ;;  %v1087_v54 = vpop.f32.mrf.mxu0 }
 0x4fa   : > { %1102 = vrot.lane.b32.xlu0 %v1087_v54, %s2047_s25  ;;  %p1960_p12 = pneg %p1959_p0 }
 0x4fb   : > { %v1659_v55 = vpop.f32.mrf.mxu1  ;;  %v1664_v56 = vpop.f32.mrf.mxu0 }
 0x4fc   : > { %p1967_p13 = pnand %p1966_p11, %p1960_p12 }
 0x4fd   : > { %v1090_v57 = vpop.f32.mrf.mxu0 }
 0x4ff   : > { %v1665_v58 = vpop.f32.mrf.mxu0 }
 0x564   : > { %v1095_v59 = vpop.permute.xlu0 %1094 }
 0x565   : > { %v1105_v61 = vsel %vm658_vm2, %v943_v41, %v1095_v59 }
 0x568   : > { %v1099_v60 = vpop.permute.xlu1 %1098 }
 0x569   : > { %v1107_v62 = vsel %vm1106_vm4, %v1105_v61, %v1099_v60 }
 0x56c   : > { %v1103_v63 = vpop.permute.xlu0 %1102 }
 0x56d   : > { %v1109_v1 = vsel %vm1108_vm5, %v1107_v62, %v1103_v63 }
 0x56e   : > { %v1110_v2 = vpack.c.bf16 %v1109_v1, %v1109_v1  ;;  %v1574_v1 = vld [vmem:[%s2487_s12] ss:$0 sm:$0xff] }
 0x570   : > { %1671 = vmatmul.mubr.msk.bf16.vlgmr.msra.gmra.mxu1 %vm576_vm1, %v1110_v2 }
 0x571   : > { %1690 = vmatprep.mubr.msk.bf16.mxu1 %vm2039_vm0, %v2038_v0  ;;  %1683 = vmatpush3.bf16.msra.mxu1 %v1799_v16 }
 0x572   : > { %1684 = vmatprep.subr.bf16.mxu1 %v2038_v0 }
 0x575   : > { %1685 = vmatpush3.bf16.msra.mxu1 %v1800_v29 }
 0x576   : > { %1686 = vmatprep.subr.bf16.mxu1 %v2038_v0 }
 0x579   : > { %1687 = vmatpush3.bf16.msra.mxu1 %v1801_v30 }
 0x57a   : > { %1688 = vmatprep.subr.bf16.mxu1 %v2038_v0  ;;  %v1568_v0 = vld [vmem:[%s2486_s11] ss:$0 sm:$0xff] }
 0x57d   : > { %1689 = vmatpush3.bf16.msra.mxu1 %v1802_v31 }
 0x630   : > { %v1171_v5 = vpop.f32.mrf.mxu1 }
 0x631   : > { %v1172_v6 = vadd.f32 %v1558_v4, %v1171_v5  ;;  %v1575_v4 = vld [vmem:[%s2488_s13] ss:$0 sm:$0xff] }
 0x632   : > { %v1672_v7 = vpop.f32.mrf.mxu1 }
 0x633   : > { %v1177_v8 = vadd.f32 %v1172_v6, %v2310_v3 }
 0x634   : > { %v1174_v9 = vpop.f32.mrf.mxu1 }
 0x635   : > { %v1180_v10 = vsel %vm576_vm1, %v1177_v8, 0.0 }
 0x636   : > { %1181 = vadd.xlane.f32.xlu1 %v1180_v10  ;;  %v1673_v11 = vpop.f32.mrf.mxu1 }
 0x6bf   : > { %v1182_v12 = vpop.xlane.xlu1 %1181 }
 0x6c0   : > { %v1184_v13 = vmul.f32 0.03125, %v1182_v12 }
 0x6c2   : > { %v1185_v14 = vsub.f32 %v1177_v8, %v1184_v13 }
 0x6c4   : > { %v1186_v17 = vmul.f32 %v1185_v14, %v1185_v14 }
 0x6c6   : > { %v1187_v18 = vsel %vm576_vm1, %v1186_v17, 0.0 }
 0x6c7   : > { %1188 = vadd.xlane.f32.xlu0 %v1187_v18 }
 0x750   : > { %v1189_v22 = vpop.xlane.xlu0 %1188 }
 0x751   : > { %v1190_v3 = vmul.f32 0.03125, %v1189_v22 }
 0x753   : > { %v1191_v23 = vadd.f32 1e-12, %v1190_v3 }
 0x755   : > { %1819 = vrsqrt.f32 %v1191_v23 }
 0x762   : > { %v1820_v24 = vpop.eup %1819 }
 0x763   : > { %v1193_v26 = vmul.f32 %v1820_v24, %v1185_v14 }
 0x765   : > { %v1200_v19 = vmul.f32 %v1562_v25, %v1193_v26 }
 0x767   : > { %v1207_v28 = vadd.f32 %v1563_v27, %v1200_v19 }
 0x769   : > { %v1208_v15 = vpack.c.bf16 %v1207_v28, %v1207_v28 }
 0x76b   : > { %1679 = vmatmul.mubr.msk.bf16.vlgmr.msra.gmra.mxu0 %vm576_vm1, %v1208_v15 }
 0x82b   : > { %v1269_v33 = vpop.f32.mrf.mxu0 }
 0x82c   : > { %v1270_v34 = vadd.f32 %v1564_v32, %v1269_v33 }
 0x82d   : > { %v1680_v35 = vpop.f32.mrf.mxu0 }
 0x82e   : > { %v1276_v36 = vmul.f32 0.044715, %v1270_v34  ;;  %v1275_v44 = vmul.f32 0.5, %v1270_v34 }
 0x82f   : > { %v1272_v37 = vpop.f32.mrf.mxu0 }
 0x830   : > { %v1277_v38 = vmul.f32 %v1276_v36, %v1270_v34 }
 0x831   : > { %v1681_v39 = vpop.f32.mrf.mxu0 }
 0x832   : > { %v1278_v40 = vmul.f32 %v1277_v38, %v1270_v34 }
 0x834   : > { %v1279_v41 = vadd.f32 %v1278_v40, %v1270_v34 }
 0x836   : > { %v1280_v42 = vmul.f32 0.7978846, %v1279_v41 }
 0x838   : > { %1821 = vtanh.f32 %v1280_v42 }
 0x845   : > { %v1822_v43 = vpop.eup %1821 }
 0x846   : > { %v1282_v45 = vadd.f32 1.0, %v1822_v43 }
 0x848   : > { %v1283_v46 = vmul.f32 %v1282_v45, %v1275_v44 }
 0x84a   : > { %v1284_v47 = vpack.c.bf16 %v1283_v46, %v1283_v46 }
 0x84c   : > { %1691 = vmatmul.mubr.msk.bf16.vlgmr.msra.gmra.mxu1 %vm1324_vm6, %v1284_v47 }
 0x90c   : > { %v1362_v48 = vpop.f32.mrf.mxu1 }
 0x90d   : > { %v1363_v49 = vadd.f32 %v1568_v0, %v1362_v48 }
 0x90e   : > { %v1692_v50 = vpop.f32.mrf.mxu1 }
 0x90f   : > { %v1368_v51 = vadd.f32 %v1363_v49, %v1207_v28 }
 0x910   : > { %v1365_v52 = vpop.f32.mrf.mxu1 }
 0x911   : > { %v1371_v53 = vsel %vm576_vm1, %v1368_v51, 0.0 }
 0x912   : > { %1372 = vadd.xlane.f32.xlu0 %v1371_v53  ;;  %v1693_v54 = vpop.f32.mrf.mxu1 }
 0x99b   : > { %v1373_v55 = vpop.xlane.xlu0 %1372 }
 0x99c   : > { %v1374_v56 = vmul.f32 0.03125, %v1373_v55 }
 0x99e   : > { %v1375_v57 = vsub.f32 %v1368_v51, %v1374_v56 }
 0x9a0   : > { %v1376_v58 = vmul.f32 %v1375_v57, %v1375_v57 }
 0x9a2   : > { %v1377_v59 = vsel %vm576_vm1, %v1376_v58, 0.0 }
 0x9a3   : > { %1378 = vadd.xlane.f32.xlu1 %v1377_v59 }
 0xa2c   : > { %v1379_v60 = vpop.xlane.xlu1 %1378 }
 0xa2d   : > { %v1380_v61 = vmul.f32 0.03125, %v1379_v60 }
 0xa2f   : > { %v1381_v62 = vadd.f32 1e-12, %v1380_v61 }
 0xa31   : > { %1823 = vrsqrt.f32 %v1381_v62 }
 0xa3e   : > { %v1824_v63 = vpop.eup %1823 }
 0xa3f   : > { %v1383_v2 = vmul.f32 %v1824_v63, %v1375_v57 }
 0xa41   : > { %v1390_v5 = vmul.f32 %v1574_v1, %v1383_v2 }
 0xa43   : > { %v1397_v6 = vadd.f32 %v1575_v4, %v1390_v5 }
 0xa45   : > { %1398 = vst.msk [vmem:[%s544_s22] sm:$0xff] %vm576_vm1, %v1397_v6 }
 0xa46   : > { %1970 = shalt.err (!%p1967_p13)
}
 0xa47   : > { %s1971_s6 = scalar_lea.hbm %s1411_s7, 128  ;;  %s1975_s25 = scalar_lea.hbm %s2489_s14, 256 }
 0xa48   : > { %p1972_p1 = scmp.ne.s32.totalorder %s1411_s7, %s1971_s6  ;;  %p1976_p6 = scmp.lt.s32.totalorder %s1411_s7, %s2489_s14 }
 0xa49   : > { %p1977_p5 = scmp.lt.s32.totalorder %s1975_s25, %s1971_s6 }
 0xa4a   : > { %p1973_p3 = pnand %p1972_p1, %p2525_p10 }
 0xa4b   : > { %p1978_p8 = por %p1977_p5, %p1976_p6 }
 0xa4c   : > { %p1974_p4 = pneg %p1973_p3 }
 0xa4e   : > { %p1979_p7 = pnand %p1978_p8, %p1974_p4 }
 0xa50   : > { %1982 = shalt.err (!%p1979_p7)
}
 0xa51   : > { %1712 = dma.vmem_to_hbm [thread:$0]  (%p2525_p10), %s1414_s18, 128, %s1411_s7, %s1400_s16  }
 0xa52 PF: > { %s2526_s28 = sld [smem:[#allocation20_spill]]  ;;  %s1425_s23 = sand.u32 1, %s2017_s29  }
 0xa53   : > { %s2527_s22 = sld [smem:[#allocation17_spill]]  ;;  %s1426_s9 = scalar_lea.sflag [#allocation4], %s1425_s23 }
 0xa58   : > { %p2528_p0 = scmp.ne.s32.totalorder %s2526_s28, 0 }
 0xa59   : > { %p2529_p12 = scmp.ge.s32.totalorder %s2527_s22, 2 }
 0xa5b   : > { %p1732_p2 = pnand %p2529_p12, %p2528_p0 }
 0xa5d   : > { %p1733_p9 = pneg %p1732_p2 }
 0xa5f   : > { %2012 = dma.done.wait (%p1733_p9), %s1426_s9, 128  }
 0xa60   : > { %2014 = vsyncadd (%p1733_p9), %s1426_s9, 4294967168  ;;  %s2530_s16 = sld [smem:[#allocation18_spill]]  ;;  %s2533_s29 = smov %s2021_s30 }
 0xa61   : > { %s2531_s20 = sld [smem:[#allocation16_spill]] }
 0xa62   : > { %s2532_s15 = sld [smem:[#allocation19_spill]] }
 0xa66   : > { %p29_p11 = scmp.ge.s32.totalorder %s2530_s16, 4  }
 0xa67   : > { %s2534_s30 = smov %s2531_s20 }
 0xa68   :  { %31 = sbr.rel (!%p29_p11) target bundleno = 12 (0xc), region = 140 }
 0xa6d   :  { %1431 = vsyncpa [#allocation3], 1 }
 0xa6e   :  { %1433 = vsyncpa [#allocation3 + $0x1], 1 }
 0xa6f   :  { %1434 = vsyncpa [#allocation6], 1 }
 0xa70   :  { %1435 = vsyncpa [#allocation9], 1 }
 0xa71   :  { %1436 = vsyncpa [#allocation4], 1 }
 0xa72   :  { %1438 = vsyncpa [#allocation4 + $0x1], 1 }

</bundles_post_ra>
